<compile_context>
chip_gen: v7x
topology: tpu7x:2x2x1
jax: 0.10.0
libtpu: 0.0.40
codegen_flags: <defaults>
</compile_context>

<pallas_src>
import functools

import jax
import jax.numpy as jnp
from jax.experimental import pallas as pl
from jax.experimental.pallas import tpu as pltpu

LANE = 128


# ------------------------------- Pallas kernel -------------------------------

def _masked_mse_kernel(o_ref, t_ref, loss_ref, num_acc, den_acc, *, no_data_val):
    """One (block_rows, 128) tile per grid step; accumulate masked SSE + count.

    o_ref, t_ref : (block_rows, 128) VMEM tiles of flattened output / target
    loss_ref     : (1, 1) scalar result (written on the last grid step)
    num_acc      : (1, 128) VMEM scratch — per-lane masked squared-error sums
    den_acc      : (1, 128) VMEM scratch — per-lane mask counts
    """
    step = pl.program_id(0)

    @pl.when(step == 0)
    def _init():
        num_acc[...] = jnp.zeros_like(num_acc)
        den_acc[...] = jnp.zeros_like(den_acc)

    o = o_ref[...]
    t = t_ref[...]
    mask = (t != no_data_val).astype(jnp.float32)
    d = o - t
    # Sublane-reduce to lane-dense (1, 128) partials; keeps the live accumulator
    # tiny (2 vregs) and the lane axis fully dense.
    num_acc[...] += jnp.sum(d * d * mask, axis=0, keepdims=True)
    den_acc[...] += jnp.sum(mask, axis=0, keepdims=True)

    @pl.when(step == pl.num_programs(0) - 1)
    def _finalize():
        num = jnp.sum(num_acc[...])
        den = jnp.sum(den_acc[...])
        loss_ref[...] = jnp.reshape(num / den, (1, 1))


# --------------------------------- wrapper -----------------------------------

def masked_mse_loss(output, target, no_data_val=-9999.0, block_rows=512):
    """Equivalent of the PyTorch module's forward(output, target) -> scalar."""
    assert output.shape == target.shape, (output.shape, target.shape)

    o = jnp.ravel(output).astype(jnp.float32)
    t = jnp.ravel(target).astype(jnp.float32)
    n = o.shape[0]

    # Lane-dense layout: flatten to (rows, 128); pad rows to a multiple of the
    # (8-aligned) block so the BlockSpec satisfies the (8, 128) constraint.
    rows = -(-n // LANE)
    block_rows = max(8, min(block_rows, ((rows + 7) // 8) * 8))
    block_rows = ((block_rows + 7) // 8) * 8
    rows_p = ((rows + block_rows - 1) // block_rows) * block_rows
    n_pad = rows_p * LANE - n

    # Pad target with no_data_val so padded elements have mask == 0 and
    # contribute nothing to either sum; padded output values are irrelevant.
    o = jnp.pad(o, (0, n_pad))
    t = jnp.pad(t, (0, n_pad), constant_values=no_data_val)
    o2 = o.reshape(rows_p, LANE)
    t2 = t.reshape(rows_p, LANE)

    grid = (rows_p // block_rows,)
    kernel = functools.partial(_masked_mse_kernel, no_data_val=float(no_data_val))

    loss = pl.pallas_call(
        kernel,
        out_shape=jax.ShapeDtypeStruct((1, 1), jnp.float32),
        grid=grid,
        in_specs=[
            pl.BlockSpec((block_rows, LANE), lambda i: (i, 0)),
            pl.BlockSpec((block_rows, LANE), lambda i: (i, 0)),
        ],
        out_specs=pl.BlockSpec((1, 1), lambda i: (0, 0)),
        scratch_shapes=[
            pltpu.VMEM((1, LANE), jnp.float32),   # numerator partials
            pltpu.VMEM((1, LANE), jnp.float32),   # denominator partials
        ],
        compiler_params=pltpu.CompilerParams(
            dimension_semantics=("arbitrary",),   # reduction axis
        ),
    )(o2, t2)

    return loss[0, 0]


# ----------------------------------- main -------------------------------------

if __name__ == "__main__":
    no_data_val = -9999.0

    key = jax.random.PRNGKey(0)
    k_out, k_tgt, k_msk = jax.random.split(key, 3)

    shape = (2, 4, 16, 16)
    output = jax.random.normal(k_out, shape, jnp.float32)
    target = jax.random.normal(k_tgt, shape, jnp.float32)
    # Mark ~20% of target pixels as no-data so the mask is exercised.
    drop = jax.random.uniform(k_msk, shape) < 0.2
    target = jnp.where(drop, jnp.float32(no_data_val), target)

    loss_fn = jax.jit(
        lambda o, t: masked_mse_loss(o, t, no_data_val=no_data_val))
    loss = loss_fn(output, target)
    jax.block_until_ready(loss)

    # Pure-JAX reference (same semantics as the PyTorch module).
    ref_mask = (target != no_data_val).astype(jnp.float32)
    ref = jnp.sum((output - target) ** 2 * ref_mask) / jnp.sum(ref_mask)

    assert loss.shape == (), loss.shape
    assert loss.dtype == jnp.float32
    assert jnp.allclose(loss, ref, rtol=1e-5, atol=1e-6), (loss, ref)
    print("KERNEL_OK")
</pallas_src>

<mosaic_0001>
module attributes {stable_mosaic.version = 11 : i64} {
  func.func @_masked_mse_kernel(%arg0: i32, %arg1: memref<16x128xf32, #tpu.memory_space<vmem>>, %arg2: memref<16x128xf32, #tpu.memory_space<vmem>>, %arg3: memref<1x1xf32, #tpu.memory_space<vmem>>, %arg4: memref<1x128xf32, #tpu.memory_space<vmem>>, %arg5: memref<1x128xf32, #tpu.memory_space<vmem>>) attributes {dimension_semantics = [#tpu.dimension_semantics<arbitrary>], iteration_bounds = array<i64: 1>, scalar_prefetch = 0 : i64, scratch_operands = 2 : i64, tpu.core_type = #tpu.core_type<tc>, window_params = [{transform_indices = @transform_0, window_bounds = array<i64: 16, 128>}, {transform_indices = @transform_1, window_bounds = array<i64: 16, 128>}, {pipeline_mode = #tpu.pipeline_mode<synchronous>, transform_indices = @transform_2, window_bounds = array<i64: 1, 1>}]} {
    %c0_i32 = arith.constant 0 : i32
    %0 = arith.cmpi eq, %arg0, %c0_i32 : i32
    %1 = arith.extui %0 : i1 to i32
    %c0_i32_0 = arith.constant 0 : i32
    %2 = arith.cmpi ne, %1, %c0_i32_0 : i32
    scf.if %2 {
      %cst_16 = arith.constant 0.000000e+00 : f32
      %25 = vector.broadcast %cst_16 : f32 to vector<1x128xf32>
      %c0_17 = arith.constant 0 : index
      %c0_18 = arith.constant 0 : index
      %26 = vector.load %arg4[%c0_17, %c0_18] : memref<1x128xf32, #tpu.memory_space<vmem>>, vector<1x128xf32>
      tpu.vector_store %arg4[%c0_17, %c0_18], %25 {strides = array<i32>} : memref<1x128xf32, #tpu.memory_space<vmem>>, vector<1x128xf32>,
      %cst_19 = arith.constant 0.000000e+00 : f32
      %27 = vector.broadcast %cst_19 : f32 to vector<1x128xf32>
      %c0_20 = arith.constant 0 : index
      %c0_21 = arith.constant 0 : index
      %28 = vector.load %arg5[%c0_20, %c0_21] : memref<1x128xf32, #tpu.memory_space<vmem>>, vector<1x128xf32>
      tpu.vector_store %arg5[%c0_20, %c0_21], %27 {strides = array<i32>} : memref<1x128xf32, #tpu.memory_space<vmem>>, vector<1x128xf32>,
    } else {
    }
    %c0 = arith.constant 0 : index
    %c0_1 = arith.constant 0 : index
    %3 = vector.load %arg1[%c0, %c0_1] : memref<16x128xf32, #tpu.memory_space<vmem>>, vector<16x128xf32>
    %c0_2 = arith.constant 0 : index
    %c0_3 = arith.constant 0 : index
    %4 = vector.load %arg2[%c0_2, %c0_3] : memref<16x128xf32, #tpu.memory_space<vmem>>, vector<16x128xf32>
    %cst = arith.constant -9.999000e+03 : f32
    %5 = vector.broadcast %cst : f32 to vector<16x128xf32>
    %6 = arith.cmpf one, %4, %5 : vector<16x128xf32>
    %7 = arith.extui %6 : vector<16x128xi1> to vector<16x128xi32>
    %8 = arith.sitofp %7 : vector<16x128xi32> to vector<16x128xf32>
    %9 = arith.subf %3, %4 : vector<16x128xf32>
    %c0_4 = arith.constant 0 : index
    %c0_5 = arith.constant 0 : index
    %10 = vector.load %arg4[%c0_4, %c0_5] : memref<1x128xf32, #tpu.memory_space<vmem>>, vector<1x128xf32>
    %11 = arith.mulf %9, %9 : vector<16x128xf32>
    %12 = arith.mulf %11, %8 : vector<16x128xf32>
    %cst_6 = arith.constant dense<0.000000e+00> : vector<128xf32>
    %13 = vector.multi_reduction <add>, %12, %cst_6 [0] : vector<16x128xf32> to vector<128xf32>
    %14 = vector.shape_cast %13 : vector<128xf32> to vector<1x128xf32>
    %15 = arith.addf %10, %14 : vector<1x128xf32>
    %c0_7 = arith.constant 0 : index
    %c0_8 = arith.constant 0 : index
    %16 = vector.load %arg4[%c0_7, %c0_8] : memref<1x128xf32, #tpu.memory_space<vmem>>, vector<1x128xf32>
    tpu.vector_store %arg4[%c0_7, %c0_8], %15 {strides = array<i32>} : memref<1x128xf32, #tpu.memory_space<vmem>>, vector<1x128xf32>,
    %c0_9 = arith.constant 0 : index
    %c0_10 = arith.constant 0 : index
    %17 = vector.load %arg5[%c0_9, %c0_10] : memref<1x128xf32, #tpu.memory_space<vmem>>, vector<1x128xf32>
    %cst_11 = arith.constant dense<0.000000e+00> : vector<128xf32>
    %18 = vector.multi_reduction <add>, %8, %cst_11 [0] : vector<16x128xf32> to vector<128xf32>
    %19 = vector.shape_cast %18 : vector<128xf32> to vector<1x128xf32>
    %20 = arith.addf %17, %19 : vector<1x128xf32>
    %c0_12 = arith.constant 0 : index
    %c0_13 = arith.constant 0 : index
    %21 = vector.load %arg5[%c0_12, %c0_13] : memref<1x128xf32, #tpu.memory_space<vmem>>, vector<1x128xf32>
    tpu.vector_store %arg5[%c0_12, %c0_13], %20 {strides = array<i32>} : memref<1x128xf32, #tpu.memory_space<vmem>>, vector<1x128xf32>,
    %c0_i32_14 = arith.constant 0 : i32
    %22 = arith.cmpi eq, %arg0, %c0_i32_14 : i32
    %23 = arith.extui %22 : i1 to i32
    %c0_i32_15 = arith.constant 0 : i32
    %24 = arith.cmpi ne, %23, %c0_i32_15 : i32
    scf.if %24 {
      %c0_16 = arith.constant 0 : index
      %c0_17 = arith.constant 0 : index
      %25 = vector.load %arg4[%c0_16, %c0_17] : memref<1x128xf32, #tpu.memory_space<vmem>>, vector<1x128xf32>
      %26 = vector.shape_cast %25 : vector<1x128xf32> to vector<1x1x128xf32>
      %cst_18 = arith.constant dense<0.000000e+00> : vector<1xf32>
      %27 = vector.multi_reduction <add>, %26, %cst_18 [1, 2] : vector<1x1x128xf32> to vector<1xf32>
      %28 = vector.shape_cast %27 : vector<1xf32> to vector<1x1x1xf32>
      %29 = vector.extract %28[0, 0, 0] : f32 from vector<1x1x1xf32>
      %c0_19 = arith.constant 0 : index
      %c0_20 = arith.constant 0 : index
      %30 = vector.load %arg5[%c0_19, %c0_20] : memref<1x128xf32, #tpu.memory_space<vmem>>, vector<1x128xf32>
      %31 = vector.shape_cast %30 : vector<1x128xf32> to vector<1x1x128xf32>
      %cst_21 = arith.constant dense<0.000000e+00> : vector<1xf32>
      %32 = vector.multi_reduction <add>, %31, %cst_21 [1, 2] : vector<1x1x128xf32> to vector<1xf32>
      %33 = vector.shape_cast %32 : vector<1xf32> to vector<1x1x1xf32>
      %34 = vector.extract %33[0, 0, 0] : f32 from vector<1x1x1xf32>
      %35 = arith.divf %29, %34 : f32
      %36 = vector.broadcast %35 : f32 to vector<1x1xf32>
      %c0_22 = arith.constant 0 : index
      %c0_23 = arith.constant 0 : index
      %37 = vector.load %arg3[%c0_22, %c0_23] : memref<1x1xf32, #tpu.memory_space<vmem>>, vector<1x1xf32>
      tpu.vector_store %arg3[%c0_22, %c0_23], %36 {strides = array<i32>} : memref<1x1xf32, #tpu.memory_space<vmem>>, vector<1x1xf32>,
    } else {
    }
    return
  }
  func.func @transform_0(%arg0: i32) -> (i32, i32) {
    %c0_i32 = arith.constant 0 : i32
    %c0_i32_0 = arith.constant 0 : i32
    return %arg0, %c0_i32 : i32, i32
  }
  func.func @transform_1(%arg0: i32) -> (i32, i32) {
    %c0_i32 = arith.constant 0 : i32
    %c0_i32_0 = arith.constant 0 : i32
    return %arg0, %c0_i32 : i32, i32
  }
  func.func @transform_2(%arg0: i32) -> (i32, i32) {
    %c0_i32 = arith.constant 0 : i32
    %c0_i32_0 = arith.constant 0 : i32
    %c0_i32_1 = arith.constant 0 : i32
    return %c0_i32, %c0_i32_0 : i32, i32
  }
}

</mosaic_0001>

<bundles_post_ra>
// kernel: _lambda_.1
= control target key start
LH: loop header
LB: loop body
LE: loop exit
PB: predicated region body
PF: predicated region fallthrough
CT: control target
= control target key end

     0   :  { %v137_v3 = vmov 0.0   ;;  %s178_s0 = inlined_call_operand.vmem [shape: f32[16,128], index: 0, kind: input, shape index: {}]   ;;  %s179_s1 = inlined_call_operand.vmem [shape: f32[16,128], index: 1, kind: input, shape index: {}]   ;;  %s180_s2 = inlined_call_operand.hbm [shape: f32[1,1], index: 2, kind: output, shape index: {}]  }
   0x1   :  { %v18_v0 = vld [vmem:[%s178_s0] sm:$0xff]  ;;  %v19_v1 = vld [vmem:[%s178_s0 + $0x8] sm:$0xff]  ;;  %16 = vst [vmem:[#allocation2] sm:$0x1] %v137_v3  ;;  %17 = vst [vmem:[#allocation3] sm:$0x1] %v137_v3 }
   0x2   :  { %v20_v2 = vld [vmem:[%s179_s1] sm:$0xff]  ;;  %v21_v4 = vld [vmem:[%s179_s1 + $0x8] sm:$0xff] }
   0x3   :  { %vm22_vm0 = vcmp.ne.f32.partialorder %v20_v2, -9999.0  ;;  %v28_v5 = vsub.f32 %v18_v0, %v20_v2 }
   0x4   :  { %7 = vsyncpa [#allocation5], 0  ;;  %vm23_vm1 = vcmp.ne.f32.partialorder %v21_v4, -9999.0  ;;  %v101_v6 = vsel %vm22_vm0, 1.0, %v137_v3  ;;  %v29_v7 = vsub.f32 %v19_v1, %v21_v4  ;;  %vm58_vm2 = vcmask 1040384  }
   0x5   :  { %v102_v8 = vsel %vm23_vm1, 1.0, %v137_v3  ;;  %v31_v9 = vmul.f32 %v28_v5, %v28_v5  ;;  %s138_s17 = smov [#allocation4]   ;;  %vm85_vm3 = vcmask 0  }
   0x6   :  { %v32_v10 = vmul.f32 %v29_v7, %v29_v7  ;;  %v45_v11 = vadd.f32 %v102_v8, %v101_v6  ;;  %s93_s18 = sshll.u32 %s138_s17, 4  ;;  %s94_s18 = int_to_ptr.vmem [resolvable:$true] %s93_s18 }
   0x7   :  { %v33_v12 = vmul.f32 %v101_v6, %v31_v9  ;;  %s113_s21 = scalar_lea.vmem %s94_s18, 16  ;;  %s117_s22 = scalar_lea.vmem %s94_s18, 32 }
   0x8   :  { %v34_v13 = vmul.f32 %v102_v8, %v32_v10  ;;  %v46_v14 = vrot.slane %v45_v11, 4  ;;  %v44_v23 = vld [vmem:[#allocation3] sm:$0x1]  ;;  %v30_v28 = vld [vmem:[#allocation2] sm:$0x1]  ;;  %p114_p0 = scmp.ne.s32.totalorder %s94_s18, %s113_s21  ;;  %p118_p1 = scmp.lt.s32.totalorder %s94_s18, %s94_s18 }
   0x9   :  { %p119_p2 = scmp.lt.s32.totalorder %s117_s22, %s113_s21 }
   0xa   :  { %v35_v15 = vadd.f32 %v34_v13, %v33_v12  ;;  %v47_v16 = vadd.f32 %v46_v14, %v45_v11 }
   0xb   :  { %p120_p3 = por %p119_p2, %p118_p1 }
   0xc   :  { %v36_v17 = vrot.slane %v35_v15, 4  ;;  %v48_v18 = vrot.slane %v47_v16, 2 }
   0xd   :  { %p121_p4 = pnand %p120_p3, %p114_p0 }
   0xe   :  { %v37_v19 = vadd.f32 %v36_v17, %v35_v15  ;;  %v49_v20 = vadd.f32 %v48_v18, %v47_v16 }
  0x10   :  { %v38_v21 = vrot.slane %v37_v19, 2  ;;  %v50_v22 = vrot.slane %v49_v20, 1 }
  0x12   :  { %v39_v24 = vadd.f32 %v38_v21, %v37_v19  ;;  %v51_v25 = vadd.f32 %v50_v22, %v49_v20 }
  0x14   :  { %v40_v26 = vrot.slane %v39_v24, 1  ;;  %v52_v27 = vadd.f32 %v51_v25, %v44_v23 }
  0x16   :  { %v41_v29 = vadd.f32 %v40_v26, %v39_v24  ;;  %53 = vst [vmem:[#allocation3] sm:$0x1] %v52_v27 }
  0x18   :  { %v42_v30 = vadd.f32 %v41_v29, %v30_v28 }
  0x1a   :  { %43 = vst [vmem:[#allocation2] sm:$0x1] %v42_v30 }
  0x1d   :  { %v69_v32 = vld [vmem:[#allocation3] sm:$0x1] }
  0x1e   :  { %v70_v34 = vsel %vm58_vm2, %v69_v32, 0.0 }
  0x21   :  { %v57_v31 = vld [vmem:[#allocation2] sm:$0x1] }
  0x22   :  { %v59_v33 = vsel %vm58_vm2, %v57_v31, 0.0 }
  0x23   :  { %60 = vadd.xlane.f32.xlu0 %v59_v33 }
  0x27   :  { %71 = vadd.xlane.f32.xlu0 %v70_v34 }
  0xb0   :  { %v61_v35 = vpop.xlane.xlu0 %60 }
  0xb1   :  { %v62_v36 = vrot.slane %v61_v35, 4 }
  0xb3   :  { %v63_v37 = vadd.f32 %v62_v36, %v61_v35 }
  0xb4   :  { %v72_v38 = vpop.xlane.xlu0 %71 }
  0xb5   :  { %v64_v39 = vrot.slane %v63_v37, 2  ;;  %v73_v40 = vrot.slane %v72_v38, 4 }
  0xb7   :  { %v74_v41 = vadd.f32 %v73_v40, %v72_v38  ;;  %v65_v42 = vadd.f32 %v64_v39, %v63_v37 }
  0xb9   :  { %v75_v43 = vrot.slane %v74_v41, 2  ;;  %v66_v44 = vrot.slane %v65_v42, 1 }
  0xbb   :  { %v76_v45 = vadd.f32 %v75_v43, %v74_v41  ;;  %v67_v46 = vadd.f32 %v66_v44, %v65_v42 }
  0xbd   :  { %103 = vpush %v67_v46  ;;  %v77_v47 = vrot.slane %v76_v45, 1 }
  0xbf   :  { %v78_v48 = vadd.f32 %v77_v47, %v76_v45 }
  0xc1   :  { %105 = vpush %v78_v48 }
  0xee   :  { %s104_s0 = spop %103 }
  0xf2   :  { %s106_s1 = spop %105 }
  0xf3   :  { %v80_v49 = vstv %s106_s1 }
  0xf4   :  { %111 = vrcp.f32 %v80_v49 }
  0xfe   :  { %v112_v50 = vpop.eup %111 }
  0xff   :  { %107 = vpush %v112_v50 }
 0x130   :  { %s108_s19 = spop %107 }
 0x131   :  { %s83_s20 = smul.f32 %s108_s19, %s104_s0 }
 0x133   :  { %v84_v51 = vstv %s83_s20 }
 0x134   :  { %86 = vst.msk [vmem:[#allocation4] sm:$0x1] %vm85_vm3, %v84_v51 }
 0x135   :  { %124 = shalt.err (!%p121_p4)
}
 0x136   :  { %s125_s25 = scalar_lea.hbm %s180_s2, 16 }
 0x137   :  { %p126_p5 = scmp.ne.s32.totalorder %s180_s2, %s125_s25  ;;  %p129_p6 = scmp.lt.u32.totalorder %s125_s25, %s180_s2 }
 0x139   :  { %p131_p7 = pnand %p129_p6, %p126_p5 }
 0x13b   :  { %134 = shalt.err (!%p131_p7)
}
 0x13c   :  { %96 = dma.vmem_to_hbm [thread:$0]  %s94_s18, 16, %s180_s2, [#allocation5]  }
 0x13d   :  { %135 = dma.done.wait [#allocation5], 16  }
 0x13e   :  { %136 = vsyncadd [#allocation5], 4294967280 }
 0x13f   :  { %100 = vsyncpa [#allocation5], 1 }

</bundles_post_ra>
